<compile_context>
chip_gen: v7x
topology: tpu7x:2x2x1
jax: 0.10.0
libtpu: 0.0.40
codegen_flags: <defaults>
</compile_context>

<pallas_src>
from functools import partial

import jax
import jax.numpy as jnp
from jax import lax
from jax.experimental import pallas as pl
from jax.experimental.pallas import tpu as pltpu

_EPS = 1e-5

# Lane-tile target (columns of the (C, N*H*W) layout per grid step).  256 keeps
# >= 2 tiles at the toy shapes below so the cross-tile BN-stats path is
# exercised; for production ResNet shapes raise to ~1024-2048 lanes, sized so
# double-buffered f32 (C, T) tiles + the 3*C-row patch group fit v7x's 64 MiB.
_LANE_TILE_TARGET = 256

# Wrapper-side im2col tap order for the strided conv1: centre tap first, so the
# 1x1 projection-shortcut input is taps[0:Cin] (a row-0, sublane-aligned slice).
_TAP_ORDER = [(1, 1), (0, 0), (0, 1), (0, 2), (1, 0), (1, 2), (2, 0), (2, 1), (2, 2)]


# ------------------------------ kernel helpers ------------------------------ #

def _images_per_tile(n, hw, target=_LANE_TILE_TARGET):
    """Whole images per lane tile: largest divisor of n with <= target lanes."""
    best = 1
    for cand in range(1, n + 1):
        if n % cand == 0 and cand * hw <= max(target, hw):
            best = cand
    return best


def _stats(a):
    """Per-channel [sum, sum of squares] over the lane (N*H*W) axis -> (C, 2)."""
    return jnp.concatenate(
        [jnp.sum(a, axis=1, keepdims=True),
         jnp.sum(a * a, axis=1, keepdims=True)], axis=1)


def _conv3x3_rolls(src, wg_ref, h, w, t):
    """3x3 same-padding conv of a lane-dense tile holding whole images.

    src:    (C, T) float32, lane p = img*h*w + y*w + x (tile = whole images).
    wg_ref: (3, Cout, 3*C) bf16 ref, wg_ref[kh][co, kw*C + ci] = W[kh, kw, ci, co].
    Returns (Cout, T) float32.

    Shifted taps come from XLU lane rolls; out-of-image taps are zeroed with
    iota-derived boundary masks, so rolls that wrap across image / tile
    boundaries never contribute.  Taps are consumed as three K=3*C bf16 MXU
    dots (grouped by kh) so only three patches are live at a time.
    """
    c = src.shape[0]
    hw = h * w
    pos = lax.broadcasted_iota(jnp.int32, (1, t), 1) % hw
    hpos = pos // w
    wpos = pos % w
    ok = {(-1, 0): hpos >= 1, (1, 0): hpos < h - 1,
          (0, -1): wpos >= 1, (0, 1): wpos < w - 1}

    acc = None
    for kh in range(3):
        dh = kh - 1
        group = []
        for kw in range(3):
            dw = kw - 1
            shift = dh * w + dw
            patch = pltpu.roll(src, shift=(-shift) % t, axis=1) if shift else src
            valid = None
            if dh:
                valid = ok[(dh, 0)]
            if dw:
                m = ok[(0, dw)]
                valid = m if valid is None else valid & m
            if valid is not None:
                patch = jnp.where(valid, patch, 0.0)
            group.append(patch)
        g = jnp.concatenate(group, axis=0).astype(jnp.bfloat16)      # (3C, T)
        part = jnp.dot(wg_ref[kh], g, preferred_element_type=jnp.float32)
        acc = part if acc is None else acc + part
    return acc                                                       # (Cout, T) f32


# --------------------------------- kernels ---------------------------------- #

def _stage1_stride1_kernel(x_ref, w1g_ref, *rest, h, w, t, downsample):
    """conv1 (3x3, stride 1) with in-kernel roll taps + partial BN1 stats;
    plus the 1x1 projection shortcut (+ its partial stats) when downsampling."""
    if downsample:
        ws_ref, acc1_ref, st1_ref, sc_ref, sts_ref = rest
    else:
        acc1_ref, st1_ref = rest
    x = x_ref[...]                                                   # (Cin, T) f32
    acc1 = _conv3x3_rolls(x, w1g_ref, h, w, t)                       # (Cp, T) f32
    acc1_ref[...] = acc1
    st1_ref[...] = _stats(acc1)
    if downsample:
        sc = jnp.dot(ws_ref[...], x.astype(jnp.bfloat16),
                     preferred_element_type=jnp.float32)
        sc_ref[...] = sc
        sts_ref[...] = _stats(sc)


def _stage1_strided_kernel(taps_ref, w1_ref, ws_ref,
                           acc1_ref, st1_ref, sc_ref, sts_ref, *, c_in):
    """conv1 (3x3, stride != 1) as one K=9*Cin bf16 MXU dot over wrapper im2col
    taps + partial BN1 stats; 1x1 projection shortcut uses the centre tap
    (taps[0:Cin]) + its partial stats."""
    taps = taps_ref[...]                                             # (9Cin, T) bf16
    acc1 = jnp.dot(w1_ref[...], taps, preferred_element_type=jnp.float32)
    acc1_ref[...] = acc1
    st1_ref[...] = _stats(acc1)
    sc = jnp.dot(ws_ref[...], taps[:c_in, :], preferred_element_type=jnp.float32)
    sc_ref[...] = sc
    sts_ref[...] = _stats(sc)


def _stage2_kernel(acc1_ref, w2g_ref, bn1_ref, acc2_ref, st2_ref, *, h, w, t):
    """y1 = relu(BN1(acc1)) with the globally-folded affine, then conv2 via
    in-kernel roll taps (3 x K=3*Cp bf16 dots); emit partial BN2 stats."""
    y1 = jnp.maximum(acc1_ref[...] * bn1_ref[:, 0:1] + bn1_ref[:, 1:2], 0.0)
    acc2 = _conv3x3_rolls(y1, w2g_ref, h, w, t)
    acc2_ref[...] = acc2
    st2_ref[...] = _stats(acc2)


def _stage3_kernel(acc2_ref, sc_ref, bn2_ref, *rest, downsample):
    """out = relu(BN2(acc2) + shortcut); shortcut = BN_s(sc) or identity."""
    if downsample:
        bns_ref, out_ref = rest
        sc = sc_ref[...] * bns_ref[:, 0:1] + bns_ref[:, 1:2]
    else:
        (out_ref,) = rest
        sc = sc_ref[...]
    y2 = acc2_ref[...] * bn2_ref[:, 0:1] + bn2_ref[:, 1:2]
    out_ref[...] = jnp.maximum(y2 + sc, 0.0)                         # lane-dense store


# --------------------------------- wrapper ----------------------------------- #

def basic_block_pallas(x_nchw, p, stride):
    N, Cin, H, W = x_nchw.shape
    Cp = p["w1"].shape[-1]
    s = stride
    H1 = (H + 2 - 3) // s + 1
    W1 = (W + 2 - 3) // s + 1
    hw = H1 * W1
    NHW = N * hw
    downsample = (s != 1) or (Cin != Cp)

    ti = _images_per_tile(N, hw)                 # whole images per lane tile
    T = ti * hw
    n_tiles = N // ti

    f32, bf16 = jnp.float32, jnp.bfloat16
    cparams = pltpu.CompilerParams(
        dimension_semantics=("parallel",),       # tiles are independent
        vmem_limit_bytes=48 * 1024 * 1024)       # fits v7x's 64 MiB physical VMEM

    def tile_spec(c):
        return pl.BlockSpec((c, T), lambda i: (0, i))

    def full_spec(shape):
        nd = len(shape)
        return pl.BlockSpec(shape, lambda i: (0,) * nd)

    stats_spec = pl.BlockSpec((Cp, 2), lambda i: (i, 0))
    stats_shape = jax.ShapeDtypeStruct((n_tiles * Cp, 2), f32)

    def act_shape(c):
        return jax.ShapeDtypeStruct((c, NHW), f32)

    def reduce_stats(st, gamma, beta):
        """Combine per-tile [sum, sumsq] into the folded BN affine (scale, shift)."""
        tot = st.reshape(n_tiles, Cp, 2).sum(axis=0)
        mu = tot[:, 0] / NHW
        var = tot[:, 1] / NHW - mu * mu           # biased (train-mode) variance
        scale = gamma * lax.rsqrt(var + _EPS)
        return jnp.stack([scale, beta - mu * scale], axis=1).astype(f32)   # (Cp, 2)

    x_nhwc = jnp.transpose(x_nchw, (0, 2, 3, 1)).astype(f32)
    w2g = jnp.transpose(p["w2"].reshape(3, 3 * Cp, Cp), (0, 2, 1)).astype(bf16)

    # ---------- stage 1: conv1 (+ projection shortcut) + partial BN stats ----------
    if s == 1:
        x_t = x_nhwc.reshape(NHW, Cin).T                              # (Cin, NHW) f32
        w1g = jnp.transpose(p["w1"].reshape(3, 3 * Cin, Cp), (0, 2, 1)).astype(bf16)
        inputs = [x_t, w1g]
        in_specs = [tile_spec(Cin), full_spec(w1g.shape)]
        out_shape = [act_shape(Cp), stats_shape]
        out_specs = [tile_spec(Cp), stats_spec]
        if downsample:
            ws_t = p["ws"].reshape(Cin, Cp).T.astype(bf16)            # (Cp, Cin)
            inputs.append(ws_t)
            in_specs.append(full_spec(ws_t.shape))
            out_shape += [act_shape(Cp), stats_shape]
            out_specs += [tile_spec(Cp), stats_spec]
        kern = partial(_stage1_stride1_kernel, h=H1, w=W1, t=T, downsample=downsample)
    else:
        # Strided conv1: wrapper im2col (centre tap first), bf16 to halve DMA bytes.
        xp = jnp.pad(x_nhwc, ((0, 0), (1, 1), (1, 1), (0, 0)))
        tap_rows, w_rows = [], []
        for kh, kw in _TAP_ORDER:
            tap = xp[:, kh:kh + s * (H1 - 1) + 1:s, kw:kw + s * (W1 - 1) + 1:s, :]
            tap_rows.append(tap.reshape(NHW, Cin).T)                  # (Cin, NHW)
            w_rows.append(p["w1"][kh, kw])                            # (Cin, Cp)
        taps_t = jnp.concatenate(tap_rows, axis=0).astype(bf16)       # (9Cin, NHW)
        w1_t = jnp.concatenate(w_rows, axis=0).T.astype(bf16)         # (Cp, 9Cin)
        ws_t = p["ws"].reshape(Cin, Cp).T.astype(bf16)
        inputs = [taps_t, w1_t, ws_t]
        in_specs = [tile_spec(9 * Cin), full_spec(w1_t.shape), full_spec(ws_t.shape)]
        out_shape = [act_shape(Cp), stats_shape, act_shape(Cp), stats_shape]
        out_specs = [tile_spec(Cp), stats_spec, tile_spec(Cp), stats_spec]
        kern = partial(_stage1_strided_kernel, c_in=Cin)

    outs = pl.pallas_call(
        kern,
        out_shape=tuple(out_shape),
        grid_spec=pltpu.PrefetchScalarGridSpec(
            num_scalar_prefetch=0, grid=(n_tiles,),
            in_specs=in_specs, out_specs=tuple(out_specs)),
        compiler_params=cparams,
    )(*inputs)

    if downsample:
        acc1, st1, sc, sts = outs
        bns = reduce_stats(sts, p["gs"], p["bs"])
    else:
        acc1, st1 = outs
        sc, bns = x_t, None                       # identity shortcut reads x directly
    bn1 = reduce_stats(st1, p["g1"], p["b1"])

    # ---------- stage 2: relu(BN1) -> conv2 + partial BN2 stats ----------
    acc2, st2 = pl.pallas_call(
        partial(_stage2_kernel, h=H1, w=W1, t=T),
        out_shape=(act_shape(Cp), stats_shape),
        grid_spec=pltpu.PrefetchScalarGridSpec(
            num_scalar_prefetch=0, grid=(n_tiles,),
            in_specs=[tile_spec(Cp), full_spec(w2g.shape), full_spec((Cp, 2))],
            out_specs=(tile_spec(Cp), stats_spec)),
        compiler_params=cparams,
    )(acc1, w2g, bn1)
    bn2 = reduce_stats(st2, p["g2"], p["b2"])

    # ---------- stage 3: BN2 + shortcut (+BN_s) + add + relu ----------
    inputs = [acc2, sc, bn2]
    in_specs = [tile_spec(Cp), tile_spec(Cp), full_spec((Cp, 2))]
    if downsample:
        inputs.append(bns)
        in_specs.append(full_spec((Cp, 2)))
    out = pl.pallas_call(
        partial(_stage3_kernel, downsample=downsample),
        out_shape=act_shape(Cp),
        grid_spec=pltpu.PrefetchScalarGridSpec(
            num_scalar_prefetch=0, grid=(n_tiles,),
            in_specs=in_specs, out_specs=tile_spec(Cp)),
        compiler_params=cparams,
    )(*inputs)

    # TODO(synk): keep activations in this lane-dense (C, N*H*W) layout between
    # stacked blocks; the NCHW round-trip below exists only for the reference check.
    return jnp.transpose(out.reshape(Cp, N, H1, W1), (1, 0, 2, 3))


# --------------------------- pure-JAX reference ----------------------------- #

def _bn_train_ref(x, gamma, beta, eps=_EPS):
    mu = jnp.mean(x, axis=(0, 1, 2), keepdims=True)
    var = jnp.mean((x - mu) ** 2, axis=(0, 1, 2), keepdims=True)
    return (x - mu) / jnp.sqrt(var + eps) * gamma + beta


def basic_block_ref(x_nchw, p, stride):
    x = jnp.transpose(x_nchw, (0, 2, 3, 1)).astype(jnp.float32)
    dn = ("NHWC", "HWIO", "NHWC")
    Cin, Cp = p["w1"].shape[2], p["w1"].shape[3]
    downsample = (stride != 1) or (Cin != Cp)

    y = lax.conv_general_dilated(x, p["w1"], (stride, stride),
                                 ((1, 1), (1, 1)), dimension_numbers=dn)
    y = jax.nn.relu(_bn_train_ref(y, p["g1"], p["b1"]))
    y = lax.conv_general_dilated(y, p["w2"], (1, 1),
                                 ((1, 1), (1, 1)), dimension_numbers=dn)
    y = _bn_train_ref(y, p["g2"], p["b2"])

    if downsample:
        sc = lax.conv_general_dilated(x, p["ws"], (stride, stride),
                                      ((0, 0), (0, 0)), dimension_numbers=dn)
        sc = _bn_train_ref(sc, p["gs"], p["bs"])
    else:
        sc = x

    out = jax.nn.relu(y + sc)
    return jnp.transpose(out, (0, 3, 1, 2))


# ------------------------------- param init --------------------------------- #

def init_params(key, in_planes, planes):
    ks = jax.random.split(key, 9)

    def conv(k, kh, kw, ci, co):
        fan_in = ci * kh * kw
        return jax.random.normal(k, (kh, kw, ci, co), jnp.float32) / jnp.sqrt(fan_in)

    return dict(
        w1=conv(ks[0], 3, 3, in_planes, planes),
        w2=conv(ks[1], 3, 3, planes, planes),
        ws=conv(ks[2], 1, 1, in_planes, planes),
        g1=jax.random.uniform(ks[3], (planes,), jnp.float32, 0.5, 1.5),
        b1=0.1 * jax.random.normal(ks[4], (planes,), jnp.float32),
        g2=jax.random.uniform(ks[5], (planes,), jnp.float32, 0.5, 1.5),
        b2=0.1 * jax.random.normal(ks[6], (planes,), jnp.float32),
        gs=jax.random.uniform(ks[7], (planes,), jnp.float32, 0.5, 1.5),
        bs=0.1 * jax.random.normal(ks[8], (planes,), jnp.float32),
    )


# ---------------------------------- main ------------------------------------- #

if __name__ == "__main__":
    key = jax.random.PRNGKey(0)
    ok = True
    configs = [
        # (in_planes, planes, stride, input shape NCHW)
        (4, 8, 2, (2, 4, 16, 16)),   # strided projection shortcut (conv1x1 + BN)
        (8, 8, 1, (2, 8, 16, 16)),   # identity shortcut (multi-tile grid path)
        (4, 8, 1, (2, 4, 16, 16)),   # stride-1 projection shortcut
    ]
    for in_planes, planes, stride, shape in configs:
        kp, kx, key = jax.random.split(key, 3)
        p = init_params(kp, in_planes, planes)
        x = jax.random.normal(kx, shape, jnp.float32)

        out = jax.block_until_ready(basic_block_pallas(x, p, stride))
        ref = jax.block_until_ready(basic_block_ref(x, p, stride))
        # Tolerance sized for bf16 MXU operands across two chained 3x3 convs +
        # BatchNorm rescaling (reference is pure f32).
        if not bool(jnp.allclose(out, ref, atol=1e-1, rtol=5e-2)):
            err = float(jnp.max(jnp.abs(out - ref)))
            print(f"mismatch (stride={stride}, Cin={in_planes}): max|err|={err:.3e}")
            ok = False

    if ok:
        print("KERNEL_OK")
    else:
        raise SystemExit("mismatch vs pure-JAX reference")
</pallas_src>

<mosaic_0001>
module attributes {stable_mosaic.version = 11 : i64} {
  func.func @_stage1_strided_kernel(%arg0: i32, %arg1: memref<36x128xbf16, #tpu.memory_space<vmem>>, %arg2: memref<8x36xbf16, #tpu.memory_space<vmem>>, %arg3: memref<8x4xbf16, #tpu.memory_space<vmem>>, %arg4: memref<8x128xf32, #tpu.memory_space<vmem>>, %arg5: memref<8x2xf32, #tpu.memory_space<vmem>>, %arg6: memref<8x128xf32, #tpu.memory_space<vmem>>, %arg7: memref<8x2xf32, #tpu.memory_space<vmem>>) attributes {dimension_semantics = [#tpu.dimension_semantics<parallel>], iteration_bounds = array<i64: 1>, scalar_prefetch = 0 : i64, scratch_operands = 0 : i64, tpu.core_type = #tpu.core_type<tc>, window_params = [{transform_indices = @transform_0, window_bounds = array<i64: 36, 128>}, {pipeline_mode = #tpu.pipeline_mode<synchronous>, transform_indices = @transform_1, window_bounds = array<i64: 8, 36>}, {pipeline_mode = #tpu.pipeline_mode<synchronous>, transform_indices = @transform_2, window_bounds = array<i64: 8, 4>}, {transform_indices = @transform_3, window_bounds = array<i64: 8, 128>}, {transform_indices = @transform_4, window_bounds = array<i64: 8, 2>}, {transform_indices = @transform_5, window_bounds = array<i64: 8, 128>}, {transform_indices = @transform_6, window_bounds = array<i64: 8, 2>}]} {
    %c0 = arith.constant 0 : index
    %c0_0 = arith.constant 0 : index
    %0 = vector.load %arg1[%c0, %c0_0] : memref<36x128xbf16, #tpu.memory_space<vmem>>, vector<36x128xbf16>
    %c0_1 = arith.constant 0 : index
    %c0_2 = arith.constant 0 : index
    %1 = vector.load %arg2[%c0_1, %c0_2] : memref<8x36xbf16, #tpu.memory_space<vmem>>, vector<8x36xbf16>
    %cst = arith.constant dense<0.000000e+00> : vector<8x128xf32>
    %2 = tpu.matmul %1, %0, %cst {dimension_numbers = #tpu.dot_dimension_numbers<[1], [0], [0], [1], [0, 0, 1, 1], [], []>} : vector<8x36xbf16>, vector<36x128xbf16>, vector<8x128xf32> -> vector<8x128xf32>
    %c0_3 = arith.constant 0 : index
    %c0_4 = arith.constant 0 : index
    %3 = vector.load %arg4[%c0_3, %c0_4] : memref<8x128xf32, #tpu.memory_space<vmem>>, vector<8x128xf32>
    tpu.vector_store %arg4[%c0_3, %c0_4], %2 {strides = array<i32>} : memref<8x128xf32, #tpu.memory_space<vmem>>, vector<8x128xf32>,
    %cst_5 = arith.constant dense<0.000000e+00> : vector<8xf32>
    %4 = vector.multi_reduction <add>, %2, %cst_5 [1] : vector<8x128xf32> to vector<8xf32>
    %5 = vector.shape_cast %4 : vector<8xf32> to vector<8x1xf32>
    %6 = arith.mulf %2, %2 : vector<8x128xf32>
    %cst_6 = arith.constant dense<0.000000e+00> : vector<8xf32>
    %7 = vector.multi_reduction <add>, %6, %cst_6 [1] : vector<8x128xf32> to vector<8xf32>
    %8 = vector.shape_cast %7 : vector<8xf32> to vector<8x1xf32>
    %9 = tpu.concatenate %5, %8 in 1 : vector<8x1xf32>, vector<8x1xf32> -> vector<8x2xf32>
    %c0_7 = arith.constant 0 : index
    %c0_8 = arith.constant 0 : index
    %10 = vector.load %arg5[%c0_7, %c0_8] : memref<8x2xf32, #tpu.memory_space<vmem>>, vector<8x2xf32>
    tpu.vector_store %arg5[%c0_7, %c0_8], %9 {strides = array<i32>} : memref<8x2xf32, #tpu.memory_space<vmem>>, vector<8x2xf32>,
    %c0_9 = arith.constant 0 : index
    %c0_10 = arith.constant 0 : index
    %11 = vector.load %arg3[%c0_9, %c0_10] : memref<8x4xbf16, #tpu.memory_space<vmem>>, vector<8x4xbf16>
    %12 = vector.extract_strided_slice %0 {offsets = [0, 0], sizes = [4, 128], strides = [1, 1]} : vector<36x128xbf16> to vector<4x128xbf16>
    %cst_11 = arith.constant dense<0.000000e+00> : vector<8x128xf32>
    %13 = tpu.matmul %11, %12, %cst_11 {dimension_numbers = #tpu.dot_dimension_numbers<[1], [0], [0], [1], [0, 0, 1, 1], [], []>} : vector<8x4xbf16>, vector<4x128xbf16>, vector<8x128xf32> -> vector<8x128xf32>
    %c0_12 = arith.constant 0 : index
    %c0_13 = arith.constant 0 : index
    %14 = vector.load %arg6[%c0_12, %c0_13] : memref<8x128xf32, #tpu.memory_space<vmem>>, vector<8x128xf32>
    tpu.vector_store %arg6[%c0_12, %c0_13], %13 {strides = array<i32>} : memref<8x128xf32, #tpu.memory_space<vmem>>, vector<8x128xf32>,
    %cst_14 = arith.constant dense<0.000000e+00> : vector<8xf32>
    %15 = vector.multi_reduction <add>, %13, %cst_14 [1] : vector<8x128xf32> to vector<8xf32>
    %16 = vector.shape_cast %15 : vector<8xf32> to vector<8x1xf32>
    %17 = arith.mulf %13, %13 : vector<8x128xf32>
    %cst_15 = arith.constant dense<0.000000e+00> : vector<8xf32>
    %18 = vector.multi_reduction <add>, %17, %cst_15 [1] : vector<8x128xf32> to vector<8xf32>
    %19 = vector.shape_cast %18 : vector<8xf32> to vector<8x1xf32>
    %20 = tpu.concatenate %16, %19 in 1 : vector<8x1xf32>, vector<8x1xf32> -> vector<8x2xf32>
    %c0_16 = arith.constant 0 : index
    %c0_17 = arith.constant 0 : index
    %21 = vector.load %arg7[%c0_16, %c0_17] : memref<8x2xf32, #tpu.memory_space<vmem>>, vector<8x2xf32>
    tpu.vector_store %arg7[%c0_16, %c0_17], %20 {strides = array<i32>} : memref<8x2xf32, #tpu.memory_space<vmem>>, vector<8x2xf32>,
    return
  }
  func.func @transform_0(%arg0: i32) -> (i32, i32) {
    %c0_i32 = arith.constant 0 : i32
    %c0_i32_0 = arith.constant 0 : i32
    return %c0_i32, %arg0 : i32, i32
  }
  func.func @transform_1(%arg0: i32) -> (i32, i32) {
    %c0_i32 = arith.constant 0 : i32
    %c0_i32_0 = arith.constant 0 : i32
    %c0_i32_1 = arith.constant 0 : i32
    return %c0_i32, %c0_i32_0 : i32, i32
  }
  func.func @transform_2(%arg0: i32) -> (i32, i32) {
    %c0_i32 = arith.constant 0 : i32
    %c0_i32_0 = arith.constant 0 : i32
    %c0_i32_1 = arith.constant 0 : i32
    return %c0_i32, %c0_i32_0 : i32, i32
  }
  func.func @transform_3(%arg0: i32) -> (i32, i32) {
    %c0_i32 = arith.constant 0 : i32
    %c0_i32_0 = arith.constant 0 : i32
    return %c0_i32, %arg0 : i32, i32
  }
  func.func @transform_4(%arg0: i32) -> (i32, i32) {
    %c0_i32 = arith.constant 0 : i32
    %c0_i32_0 = arith.constant 0 : i32
    return %arg0, %c0_i32 : i32, i32
  }
  func.func @transform_5(%arg0: i32) -> (i32, i32) {
    %c0_i32 = arith.constant 0 : i32
    %c0_i32_0 = arith.constant 0 : i32
    return %c0_i32, %arg0 : i32, i32
  }
  func.func @transform_6(%arg0: i32) -> (i32, i32) {
    %c0_i32 = arith.constant 0 : i32
    %c0_i32_0 = arith.constant 0 : i32
    return %arg0, %c0_i32 : i32, i32
  }
}

</mosaic_0001>

<bundles_post_ra>
// kernel: tpu_custom_call.1
= control target key start
LH: loop header
LB: loop body
LE: loop exit
PB: predicated region body
PF: predicated region fallthrough
CT: control target
= control target key end

     0   :  { %12 = vsyncpa [#allocation3], 0  ;;  %s406_s0 = inlined_call_operand.hbm [shape: bf16[36,128], index: 0, kind: input, shape index: {}]   ;;  %s407_s1 = inlined_call_operand.vmem [shape: bf16[8,36], index: 1, kind: input, shape index: {}]   ;;  %s408_s2 = inlined_call_operand.vmem [shape: bf16[8,4], index: 2, kind: input, shape index: {}]   ;;  %s409_s3 = inlined_call_operand.hbm [shape: f32[8,128], index: 3, kind: output, shape index: {0}]   ;;  %s410_s4 = inlined_call_operand.vmem [shape: f32[8,2], index: 4, kind: output, shape index: {1}]   ;;  %s411_s5 = inlined_call_operand.hbm [shape: f32[8,128], index: 5, kind: output, shape index: {2}]   ;;  %s412_s6 = inlined_call_operand.vmem [shape: f32[8,2], index: 6, kind: output, shape index: {3}]  }
   0x1   :  { %13 = vsyncpa [#allocation4], 0 }
   0x2   :  { %14 = vsyncpa [#allocation7], 0  ;;  %s316_s21 = smov [#allocation2]   ;;  %s244_s25 = scalar_lea.hbm %s406_s0, 320 }
   0x3   :  { %s20_s22 = sshll.u32 %s316_s21, 4  ;;  %p245_p0 = scmp.ne.s32.totalorder %s406_s0, %s244_s25  ;;  %s21_s22 = int_to_ptr.vmem [resolvable:$true] %s20_s22 }
   0x4   :  { %p248_p1 = scmp.lt.u32.totalorder %s244_s25, %s406_s0 }
   0x6   :  { %p250_p2 = pnand %p248_p1, %p245_p0 }
   0x8   :  { %253 = shalt.err (!%p250_p2)
}
   0x9   :  { %s254_s30 = scalar_lea.vmem %s21_s22, 320  ;;  %p259_p4 = scmp.lt.s32.totalorder %s21_s22, %s21_s22 }
   0xa   :  { %p255_p3 = scmp.ne.s32.totalorder %s21_s22, %s254_s30  ;;  %p260_p5 = scmp.lt.s32.totalorder %s254_s30, %s254_s30 }
   0xc   :  { %p261_p6 = por %p260_p5, %p259_p4 }
   0xe   :  { %p262_p7 = pnand %p261_p6, %p255_p3 }
  0x10   :  { %265 = shalt.err (!%p262_p7)
}
  0x11   :  { %s317_s7 = smov 64   ;;  %s318_s8 = smov 4  }
  0x12   :  { %26 = dma.hbm_to_vmem [thread:$0]  %s406_s0, 320, %s21_s22, [#allocation3], %s317_s7, %s317_s7, %s318_s8  }
  0x13   :  { %310 = dma.done.wait [#allocation3], 320  }
  0x14   :  { %311 = vsyncadd [#allocation3], 4294966976  ;;  %v319_v0 = vmov 0.0   ;;  %vm320_vm0 = vmmov 0   ;;  %vm60_vm1 = vcmask 1041408   ;;  %vm115_vm2 = vcmask 31744  }
  0x15   :  { %218 = vmatprep.subr.bf16.mxu0 %v319_v0  ;;  %228 = vmatprep.subr.bf16.mxu1 %v319_v0  ;;  %v35_v1 = vld [vmem:[#allocation2] sm:$0xf]  ;;  %v36_v2 = vld [vmem:[#allocation2 + $0x4] sm:$0xf]  ;;  %v242_v6 = vld [vmem:[#allocation2 + $0x8] sm:$0xff]   ;;  %vm56_vm3 = vcmask 293888  }
  0x16   :  { %230 = vmatprep.mubr.msk.bf16.mxu1 %vm320_vm0, %v319_v0  ;;  %224 = vmatprep.mubr.msk.bf16.mxu0 %vm320_vm0, %v319_v0  ;;  %v207_v3 = vcombine.low %v35_v1, %v36_v2  ;;  %v120_v4 = vsel %vm60_vm1, %v35_v1, 0  ;;  %v114_v5 = vld [vmem:[%s408_s2] sm:$0xf]  ;;  %v243_v7 = vld [vmem:[#allocation2 + $0x10] ss:$0 sps:$4 sm:$0x33]  }
  0x17   :  { %229 = vmatpush3.bf16.msra.mxu1 %v120_v4  ;;  %v62_v8 = vsel %vm60_vm1, %v243_v7, 0  ;;  %v40_v9 = vld [vmem:[%s407_s1] sm:$0xf]  ;;  %s321_s2 = smov [#allocation5]   ;;  %s322_s14 = smov [#allocation6]  }
  0x18   :  { %219 = vmatpush3.bf16.msra.mxu0 %v207_v3  ;;  %s176_s1 = sshll.u32 %s321_s2, 4  ;;  %s188_s15 = sshll.u32 %s322_s14, 4  ;;  %s177_s1 = int_to_ptr.vmem [resolvable:$true] %s176_s1  ;;  %s189_s15 = int_to_ptr.vmem [resolvable:$true] %s188_s15 }
  0x19   :  { %220 = vmatprep.subr.bf16.mxu0 %v319_v0  ;;  %s266_s16 = scalar_lea.vmem %s177_s1, 128  ;;  %p271_p9 = scmp.lt.s32.totalorder %s177_s1, %s177_s1 }
  0x1a   :  { %231 = vmatmul.mubr.msk.bf16.vlgmr.msra.gmra.mrb[0].mxu1 %vm115_vm2, %v114_v5  ;;  %p267_p8 = scmp.ne.s32.totalorder %s177_s1, %s266_s16  ;;  %p272_p10 = scmp.lt.s32.totalorder %s266_s16, %s266_s16 }
  0x1c   :  { %221 = vmatpush3.bf16.msra.mxu0 %v242_v6  ;;  %p273_p11 = por %p272_p10, %p271_p9 }
  0x1d   :  { %222 = vmatprep.subr.bf16.mxu0 %v319_v0 }
  0x1e   :  { %p274_p12 = pnand %p273_p11, %p267_p8 }
  0x20   :  { %223 = vmatpush3.bf16.msra.mxu0 %v62_v8 }
  0x23   :  { %225 = vmatmul.mubr.msk.bf16.vlgmr.msra.gmra.mrb[0].mxu0 %vm56_vm3, %v40_v9 }
  0xed   :  { %v156_v10 = vpop.f32.mrb[0].mxu1 }
  0xee   :  { %162 = vst [vmem:[#allocation6] sm:$0xff] %v156_v10  ;;  %163 = vadd.xlane.f32.xlu1 %v156_v10  ;;  %v232_v11 = vpop.f32.mrb[1].mxu1  ;;  %v165_v12 = vmul.f32 %v156_v10, %v156_v10 }
  0xef   :  { %v159_v13 = vpop.f32.mrb[2].mxu1 }
  0xf0   :  { %v233_v14 = vpop.f32.mrb[3].mxu1 }
  0xf2   :  { %166 = vadd.xlane.f32.xlu1 %v165_v12 }
  0xf6   :  { %v98_v15 = vpop.f32.mrb[0].mxu0 }
  0xf7   :  { %104 = vst [vmem:[#allocation5] sm:$0xff] %v98_v15  ;;  %105 = vadd.xlane.f32.xlu0 %v98_v15  ;;  %v226_v16 = vpop.f32.mrb[1].mxu0  ;;  %v107_v19 = vmul.f32 %v98_v15, %v98_v15 }
  0xf8   :  { %v101_v17 = vpop.f32.mrb[2].mxu0 }
  0xf9   :  { %v227_v18 = vpop.f32.mrb[3].mxu0 }
  0xfb   :  { %108 = vadd.xlane.f32.xlu0 %v107_v19 }
  0xfc   :  { %277 = shalt.err (!%p274_p12)
}
  0xfd   :  { %s278_s19 = scalar_lea.hbm %s409_s3, 128 }
  0xfe   :  { %p279_p13 = scmp.ne.s32.totalorder %s409_s3, %s278_s19  ;;  %p282_p0 = scmp.lt.u32.totalorder %s278_s19, %s409_s3 }
 0x100   :  { %p284_p1 = pnand %p282_p0, %p279_p13 }
 0x102   :  { %287 = shalt.err (!%p284_p1)
}
 0x103   :  { %179 = dma.vmem_to_hbm [thread:$0]  %s177_s1, 128, %s409_s3, [#allocation4]  }
 0x104   :  { %s288_s26 = scalar_lea.vmem %s189_s15, 128  ;;  %p293_p3 = scmp.lt.s32.totalorder %s189_s15, %s189_s15 }
 0x105   :  { %p289_p2 = scmp.ne.s32.totalorder %s189_s15, %s288_s26  ;;  %p294_p4 = scmp.lt.s32.totalorder %s288_s26, %s288_s26 }
 0x107   :  { %p295_p5 = por %p294_p4, %p293_p3 }
 0x109   :  { %p296_p6 = pnand %p295_p5, %p289_p2 }
 0x10b   :  { %299 = shalt.err (!%p296_p6)
}
 0x10c   :  { %s300_s29 = scalar_lea.hbm %s411_s5, 128 }
 0x10d   :  { %p301_p7 = scmp.ne.s32.totalorder %s411_s5, %s300_s29  ;;  %p304_p8 = scmp.lt.u32.totalorder %s300_s29, %s411_s5 }
 0x10f   :  { %p306_p9 = pnand %p304_p8, %p301_p7 }
 0x111   :  { %309 = shalt.err (!%p306_p9)
}
 0x112   :  { %191 = dma.vmem_to_hbm [thread:$0]  %s189_s15, 128, %s411_s5, [#allocation7]   ;;  %vm110_vm4 = vcmask 7168   ;;  %vm112_vm5 = vcmask 15360  }
 0x17b   :  { %v164_v20 = vpop.xlane.xlu1 %163 }
 0x17f   :  { %v167_v21 = vpop.xlane.xlu1 %166 }
 0x180   :  { %v168_v22 = vsel %vm110_vm4, %v164_v20, %v167_v21 }
 0x181   :  { %169 = vst.msk [vmem:[%s412_s6] sm:$0xff] %vm112_vm5, %v168_v22 }
 0x184   :  { %v106_v23 = vpop.xlane.xlu0 %105 }
 0x188   :  { %v109_v24 = vpop.xlane.xlu0 %108 }
 0x189   :  { %v111_v25 = vsel %vm110_vm4, %v106_v23, %v109_v24 }
 0x18a   :  { %113 = vst.msk [vmem:[%s410_s4] sm:$0xff] %vm112_vm5, %v111_v25 }
 0x18b   :  { %312 = dma.done.wait [#allocation4], 128  }
 0x18c   :  { %313 = vsyncadd [#allocation4], 4294967168 }
 0x18d   :  { %314 = dma.done.wait [#allocation7], 128  }
 0x18e   :  { %315 = vsyncadd [#allocation7], 4294967168 }
 0x18f   :  { %204 = vsyncpa [#allocation3], 1 }
 0x190   :  { %205 = vsyncpa [#allocation4], 1 }
 0x191   :  { %206 = vsyncpa [#allocation7], 1 }

</bundles_post_ra>
